<compile_context>
chip_gen: v7x
topology: tpu7x:2x2x1
jax: 0.10.0
libtpu: 0.0.40
codegen_flags: <defaults>
</compile_context>

<pallas_src>
import jax
import jax.numpy as jnp
from jax import lax
from jax.experimental import pallas as pl
from jax.experimental.pallas import tpu as pltpu

_EPS = 1e-5                      # torch.nn.GroupNorm default eps
_INV_SQRT2 = 0.7071067811865476  # 1/sqrt(2) for exact (erf) GELU


def _round_up(a, b):
    return (a + b - 1) // b * b


def _stats_kernel(x_ref, sums_ref):
    """Per-(sample, S-tile) channel sums of x and x^2.

    x_ref:    (1, C, TS)
    sums_ref: (1, 1, C, 2)   [..., 0] = sum(x), [..., 1] = sum(x^2)
    """
    x = x_ref[0].astype(jnp.float32)                       # (C, TS)
    s1 = jnp.sum(x, axis=-1, keepdims=True)                # (C, 1)
    s2 = jnp.sum(x * x, axis=-1, keepdims=True)            # (C, 1)
    sums_ref[0, 0] = jnp.concatenate([s1, s2], axis=-1)    # (C, 2)


def _apply_kernel(x_ref, ss_ref, w_ref, b_ref, o_ref):
    """Fused GroupNorm-affine + GELU + 1x1 conv on one lane-dense (C, TS) tile.

    x_ref:  (1, C, TS)
    ss_ref: (1, C, 2)    per-sample fused affine: [:, 0] = scale, [:, 1] = shift
    w_ref:  (Cout, C)
    b_ref:  (Cout, 1)
    o_ref:  (1, Cout, TS)
    """
    x = x_ref[0].astype(jnp.float32)                       # (C, TS)
    ss = ss_ref[0]                                         # (C, 2)
    scale = ss[:, 0:1]                                     # (C, 1)
    shift = ss[:, 1:2]                                     # (C, 1)

    # GroupNorm folded to a single FMA per element on the hot (C, TS) array.
    y = x * scale + shift
    # Exact (erf) GELU -- matches torch.nn.GELU default.
    y = 0.5 * y * (1.0 + lax.erf(y * _INV_SQRT2))

    C = y.shape[0]
    _, cout, ts = o_ref.shape
    if C <= 16:
        # Tiny contraction: unrolled broadcast-FMAs on the VPU. K=C here would
        # fill <2% of the MXU rows and still pay matmul push/pop latency.
        acc = jnp.broadcast_to(b_ref[...].astype(jnp.float32), (cout, ts))
        for c in range(C):  # static unroll (C known at trace time)
            acc = acc + w_ref[:, c:c + 1] * y[c:c + 1, :]
        out = acc
    else:
        # Larger C: bf16 MXU operands (MXU-native on v5e/v6e/v7x), f32 accum.
        out = jnp.dot(w_ref[...].astype(jnp.bfloat16),
                      y.astype(jnp.bfloat16),
                      preferred_element_type=jnp.float32) + b_ref[...]
    o_ref[0] = out.astype(o_ref.dtype)


def conv1x1_forward(x, gamma, beta, weight, bias, num_groups, *, tile_s=None):
    """x: (N, C, D, H, W); weight: (Cout, Cin, 1, 1, 1); bias: (Cout,)."""
    N, C, D, H, W = x.shape
    S = D * H * W
    Cout = weight.shape[0]
    gs = C // num_groups

    if tile_s is None:
        # Lane-dense tile; keep double-buffered (C+Cout)*TS*4B traffic well
        # inside v7x's 64 MiB VMEM (with headroom for compiler scratch).
        budget = 16 * 1024 * 1024
        per_lane = (C + Cout) * 4 * 2
        tile_s = max(128, min(2048, (budget // per_lane) // 128 * 128))
        tile_s = min(tile_s, _round_up(S, 128))
    assert tile_s % 128 == 0, "tile_s must be lane-dense (multiple of 128)"

    S_pad = _round_up(S, tile_s)
    nS = S_pad // tile_s

    xf = x.reshape(N, C, S)
    if S_pad != S:
        # Zero padding contributes nothing to the sums; stats divide by the
        # true element count, and padded output columns are sliced off below.
        xf = jnp.pad(xf, ((0, 0), (0, 0), (0, S_pad - S)))

    compiler_params = pltpu.CompilerParams(
        dimension_semantics=("parallel", "parallel"),
        vmem_limit_bytes=32 * 1024 * 1024,
    )

    # ---- Phase 1: per-(sample, tile) partial channel sums -------------------
    sums = pl.pallas_call(
        _stats_kernel,
        out_shape=jax.ShapeDtypeStruct((N, nS, C, 2), jnp.float32),
        grid=(N, nS),
        in_specs=[pl.BlockSpec((1, C, tile_s), lambda n, s: (n, 0, s))],
        out_specs=pl.BlockSpec((1, 1, C, 2), lambda n, s: (n, s, 0, 0)),
        compiler_params=compiler_params,
    )(xf)

    # ---- Tiny per-sample GroupNorm statistics in XLA (O(N*C) work) ----------
    tot = sums.sum(axis=1)                                       # (N, C, 2)
    cnt = float(gs * S)                                          # true count
    gsum = tot[..., 0].reshape(N, num_groups, gs).sum(-1)        # (N, G)
    gsq = tot[..., 1].reshape(N, num_groups, gs).sum(-1)         # (N, G)
    gmean = gsum / cnt
    # NOTE: one-pass E[x^2]-E[x]^2 variance in f32; fine for typical activation
    # scales (swap to a two-pass form if |mean| >> std in production).
    gvar = gsq / cnt - gmean * gmean
    inv = lax.rsqrt(gvar + _EPS)
    inv_c = jnp.repeat(inv, gs, axis=1)                          # (N, C)
    mean_c = jnp.repeat(gmean, gs, axis=1)                       # (N, C)
    scale = inv_c * gamma.reshape(1, C)
    shift = beta.reshape(1, C) - mean_c * scale
    ss = jnp.stack([scale, shift], axis=-1).astype(jnp.float32)  # (N, C, 2)

    w2 = weight.reshape(Cout, C).astype(jnp.float32)
    b2 = bias.reshape(Cout, 1).astype(jnp.float32)

    # ---- Phase 2: normalize + GELU + 1x1 conv on lane-dense tiles -----------
    out = pl.pallas_call(
        _apply_kernel,
        out_shape=jax.ShapeDtypeStruct((N, Cout, S_pad), x.dtype),
        grid=(N, nS),
        in_specs=[
            pl.BlockSpec((1, C, tile_s), lambda n, s: (n, 0, s)),
            pl.BlockSpec((1, C, 2), lambda n, s: (n, 0, 0)),
            pl.BlockSpec((Cout, C), lambda n, s: (0, 0)),
            pl.BlockSpec((Cout, 1), lambda n, s: (0, 0)),
        ],
        out_specs=pl.BlockSpec((1, Cout, tile_s), lambda n, s: (n, 0, s)),
        compiler_params=compiler_params,
    )(xf, ss, w2, b2)

    if S_pad != S:
        out = out[:, :, :S]
    return out.reshape(N, Cout, D, H, W)


def _reference(x, gamma, beta, weight, bias, num_groups):
    """Pure-JAX reference replicating torch GroupNorm -> GELU -> Conv3d(1x1)."""
    N, C, D, H, W = x.shape
    gs = C // num_groups
    xg = x.reshape(N, num_groups, gs * D * H * W)
    mean = xg.mean(axis=-1, keepdims=True)
    var = ((xg - mean) ** 2).mean(axis=-1, keepdims=True)
    xn = ((xg - mean) / jnp.sqrt(var + _EPS)).reshape(N, C, D, H, W)
    y = xn * gamma.reshape(1, C, 1, 1, 1) + beta.reshape(1, C, 1, 1, 1)
    y = 0.5 * y * (1.0 + lax.erf(y / jnp.sqrt(2.0)))
    w2 = weight.reshape(weight.shape[0], C)
    out = jnp.einsum('oc,ncdhw->nodhw', w2, y) + bias.reshape(1, -1, 1, 1, 1)
    return out


if __name__ == "__main__":
    # Module config: Conv1x1(cin=4, cout=8, dimgroup=2) -> GroupNorm(2 groups, 4 ch)
    cin, cout, dimgroup = 4, 8, 2
    num_groups = cin // dimgroup
    # S = 3*8*10 = 240: exercises S-tiling (two 128-lane tiles) and lane padding.
    N, D, H, W = 2, 3, 8, 10

    key = jax.random.PRNGKey(0)
    kx, kg, kb, kw, kbias = jax.random.split(key, 5)
    x = jax.random.normal(kx, (N, cin, D, H, W), dtype=jnp.float32)
    gamma = 1.0 + 0.1 * jax.random.normal(kg, (cin,), dtype=jnp.float32)
    beta = 0.1 * jax.random.normal(kb, (cin,), dtype=jnp.float32)
    weight = 0.5 * jax.random.normal(kw, (cout, cin, 1, 1, 1), dtype=jnp.float32)
    bias = 0.1 * jax.random.normal(kbias, (cout,), dtype=jnp.float32)

    out = conv1x1_forward(x, gamma, beta, weight, bias, num_groups, tile_s=128)
    out = jax.block_until_ready(out)

    ref = _reference(x, gamma, beta, weight, bias, num_groups)
    assert out.shape == (N, cout, D, H, W)
    assert jnp.allclose(out, ref, rtol=1e-4, atol=1e-4), "mismatch vs reference"

    print("KERNEL_OK")
</pallas_src>

<mosaic_0001>
module attributes {stable_mosaic.version = 11 : i64} {
  func.func @_stats_kernel(%arg0: i32, %arg1: i32, %arg2: memref<1x4x128xf32, #tpu.memory_space<vmem>>, %arg3: memref<1x1x4x2xf32, #tpu.memory_space<vmem>>) attributes {dimension_semantics = [#tpu.dimension_semantics<parallel>, #tpu.dimension_semantics<parallel>], iteration_bounds = array<i64: 2, 2>, scalar_prefetch = 0 : i64, scratch_operands = 0 : i64, tpu.core_type = #tpu.core_type<tc>, window_params = [{transform_indices = @transform_0, window_bounds = array<i64: 1, 4, 128>}, {transform_indices = @transform_1, window_bounds = array<i64: 1, 1, 4, 2>}]} {
    %c0 = arith.constant 0 : index
    %c0_0 = arith.constant 0 : index
    %c0_1 = arith.constant 0 : index
    %0 = vector.load %arg2[%c0, %c0_0, %c0_1] : memref<1x4x128xf32, #tpu.memory_space<vmem>>, vector<1x4x128xf32>
    %1 = vector.shape_cast %0 : vector<1x4x128xf32> to vector<4x128xf32>
    %cst = arith.constant dense<0.000000e+00> : vector<4xf32>
    %2 = vector.multi_reduction <add>, %1, %cst [1] : vector<4x128xf32> to vector<4xf32>
    %3 = vector.shape_cast %2 : vector<4xf32> to vector<4x1xf32>
    %4 = arith.mulf %1, %1 : vector<4x128xf32>
    %cst_2 = arith.constant dense<0.000000e+00> : vector<4xf32>
    %5 = vector.multi_reduction <add>, %4, %cst_2 [1] : vector<4x128xf32> to vector<4xf32>
    %6 = vector.shape_cast %5 : vector<4xf32> to vector<4x1xf32>
    %7 = tpu.concatenate %3, %6 in 1 : vector<4x1xf32>, vector<4x1xf32> -> vector<4x2xf32>
    %c0_3 = arith.constant 0 : index
    %c0_4 = arith.constant 0 : index
    %c0_5 = arith.constant 0 : index
    %c0_6 = arith.constant 0 : index
    %8 = vector.load %arg3[%c0_3, %c0_4, %c0_5, %c0_6] : memref<1x1x4x2xf32, #tpu.memory_space<vmem>>, vector<1x1x4x2xf32>
    %9 = vector.shape_cast %8 : vector<1x1x4x2xf32> to vector<4x2xf32>
    %10 = vector.shape_cast %7 : vector<4x2xf32> to vector<1x1x4x2xf32>
    tpu.vector_store %arg3[%c0_3, %c0_4, %c0_5, %c0_6], %10 {strides = array<i32>} : memref<1x1x4x2xf32, #tpu.memory_space<vmem>>, vector<1x1x4x2xf32>,
    return
  }
  func.func @transform_0(%arg0: i32, %arg1: i32) -> (i32, i32, i32) {
    %c0_i32 = arith.constant 0 : i32
    %c0_i32_0 = arith.constant 0 : i32
    return %arg0, %c0_i32, %arg1 : i32, i32, i32
  }
  func.func @transform_1(%arg0: i32, %arg1: i32) -> (i32, i32, i32, i32) {
    %c0_i32 = arith.constant 0 : i32
    %c0_i32_0 = arith.constant 0 : i32
    %c0_i32_1 = arith.constant 0 : i32
    return %arg0, %arg1, %c0_i32, %c0_i32_0 : i32, i32, i32, i32
  }
}

</mosaic_0001>

<bundles_post_ra>
// kernel: tpu_custom_call.1
= control target key start
LH: loop header
LB: loop body
LE: loop exit
PB: predicated region body
PF: predicated region fallthrough
CT: control target
= control target key end

     0   :  { %6 = vsyncpa [#allocation3], 0  ;;  %s610_s0 = inlined_call_operand.hbm [shape: f32[2,4,256], index: 0, kind: input, shape index: {}]   ;;  %s611_s1 = inlined_call_operand.vmem [shape: f32[2,2,4,2], index: 1, kind: output, shape index: {}]  }
   0x1   :  { %8 = vsyncpa [#allocation3 + $0x1], 0  ;;  %s458_s6 = smov 0   ;;  %s460_s7 = smov 0  }
   0x2   :  { %s462_s8 = smov 0   ;;  %s464_s9 = smov 0  }
   0x3   :  { %s466_s10 = smov 0   ;;  %s468_s11 = smov 0  }
   0x4   :  { %s470_s12 = smov 0   ;;  %s472_s13 = smov 0  }
   0x5 LB: > { %s265_s14 = sadd.s32 4294967295, %s445_s13   ;;  %s23_s15 = sadd.s32 1, %s437_s11  ;;  %s445_s13 = sphi %s472_s13, %s14_s13   ;;  %s441_s12 = sphi %s470_s12, %s623_s12   ;;  %s437_s11 = sphi %s468_s11, %s622_s11   ;;  %s433_s10 = sphi %s466_s10, %s621_s10   ;;  %s429_s9 = sphi %s464_s9, %s620_s9   ;;  %s425_s8 = sphi %s462_s8, %s619_s8   ;;  %s421_s7 = sphi %s460_s7, %s618_s7   ;;  %s417_s6 = sphi %s458_s6, %s617_s6  }
   0x6   : > { %p24_p0 = scmp.ge.s32.totalorder %s23_s15, 2  ;;  %s26_s16 = sadd.s32 1, %s441_s12 }
   0x7   : > { %s35_s17 = sadd.s32 1, %s425_s8  ;;  %p42_p1 = scmp.ne.s32.totalorder %s425_s8, %s421_s7 }
   0x8   : > { %s625_s15 = smov (%p24_p0, %s23_s15), 0  ;;  %s627_s16 = smov (!%p24_p0, %s26_s16), %s441_s12 }
   0x9   : > { %s31_s18 = ssub.s32 %s437_s11, %s625_s15  ;;  %p43_p2 = scmp.eq.s32.totalorder %s445_s13, 0 }
   0xa   : > { %p28_p3 = scmp.ge.s32.totalorder %s627_s16, 2  ;;  %p48_p4 = scmp.ne.s32.totalorder %s421_s7, %s417_s6 }
   0xb   : > { %p509_p5 = por %p43_p2, %p42_p1  ;;  %p49_p6 = scmp.eq.s32.totalorder %s265_s14, 0 }
   0xc   : > { %s629_s16 = smov (%p28_p3, %s627_s16), 0  ;;  %p284_p8 = scmp.lt.s32.totalorder %s445_s13, 4 }
   0xd   : > { %p515_p7 = por %p49_p6, %p48_p4  ;;  %s30_s21 = ssub.s32 %s441_s12, %s629_s16 }
   0xe   : > { %s32_s22 = sor.u32 %s31_s18, %s30_s21  ;;  %s100_s23 = sand.u32 1, %s425_s8  }
   0xf   : > { %p33_p9 = scmp.eq.s32.totalorder %s32_s22, 0  ;;  %s269_s24 = sshll.u32 %s100_s23, 2 }
  0x10   : > { %s270_s25 = sshll.u32 %s441_s12, 1  ;;  %s104_s29 = scalar_lea.vmem [#allocation2], %s269_s24 }
  0x11   : > { %s525_s26 = scalar_select %p33_p9, %s425_s8, %s35_s17  }
  0x12   : > { %s109_s27 = sadd.s32 %s437_s11, %s270_s25  ;;  %s113_s30 = sshll.u32 %s104_s29, 4  ;;  %s533_s30 = int_to_ptr.vmem [resolvable:$true] %s113_s30 }
  0x13   : > { %s271_s28 = sshll.u32 %s109_s27, 6  ;;  %p539_p10 = pnand %p284_p8, %p509_p5 }
  0x14   : > { %s531_s4 = scalar_lea.hbm %s610_s0, %s271_s28  ;;  %s101_s6 = scalar_lea.sflag [#allocation3], %s100_s23 }
  0x15   : > { %s349_s14 = scalar_lea.hbm %s531_s4, 64  ;;  %p351_p0 = pneg %p539_p10 }
  0x16   : > { %p350_p13 = scmp.ne.s32.totalorder %s531_s4, %s349_s14  ;;  %s354_s19 = scalar_lea.hbm %s610_s0, 256 }
  0x17   : > { %p355_p3 = scmp.lt.u32.totalorder %s531_s4, %s610_s0  ;;  %p356_p4 = scmp.lt.u32.totalorder %s354_s19, %s349_s14 }
  0x18   : > { %p352_p1 = pnand %p351_p0, %p350_p13  ;;  %p358_p6 = scmp.lt.u32.totalorder %s349_s14, %s531_s4 }
  0x19   : > { %p357_p5 = por %p356_p4, %p355_p3 }
  0x1a   : > { %p353_p2 = pneg %p352_p1 }
  0x1b   : > { %p359_p8 = por %p358_p6, %p357_p5 }
  0x1d   : > { %p360_p9 = pnand %p359_p8, %p353_p2 }
  0x1f   : > { %363 = shalt.err (!%p360_p9)
}
  0x20   : > { %s364_s23 = scalar_lea.vmem %s533_s30, 64  ;;  %s447_s24 = smov [#allocation2]  }
  0x21   : > { %p365_p13 = scmp.ne.s32.totalorder %s533_s30, %s364_s23  ;;  %s369_s25 = sshll.u32 %s447_s24, 4  ;;  %s370_s25 = int_to_ptr.vmem [resolvable:$false] %s369_s25 }
  0x22   : > { %s371_s27 = scalar_lea.vmem %s370_s25, 128  ;;  %p372_p12 = scmp.lt.s32.totalorder %s533_s30, %s370_s25 }
  0x23   : > { %p367_p1 = pnand %p365_p13, %p351_p0  ;;  %p373_p3 = scmp.lt.s32.totalorder %s371_s27, %s364_s23 }
  0x25   : > { %p368_p11 = pneg %p367_p1  ;;  %p374_p4 = por %p373_p3, %p372_p12 }
  0x27   : > { %p375_p5 = pnand %p374_p4, %p368_p11 }
  0x29   : > { %378 = shalt.err (!%p375_p5)
}
  0x2a   : > { %283 = dma.hbm_to_vmem [thread:$0]  (!%p539_p10), %s531_s4, 64, %s533_s30, %s101_s6  }
  0x2b   : > { %p615_p2 = scmp.lt.s32.totalorder %s445_s13, 5  ;;  %p616_p6 = scmp.ge.s32.totalorder %s445_s13, 1 }
  0x2d   : > { %p119_p0 = pnand %p616_p6, %p615_p2 }
  0x2e   : > { %s124_s28 = sand.u32 (!%p119_p0), 1, %s421_s7  }
  0x2f   : > { %122 = sbr.rel (%p119_p0) target bundleno = 205 (0xcd), region = 24  ;;  %s273_s29 = sshll.u32 (!%p119_p0), %s124_s28, 2 }
  0x30   : > { %s125_s2 = scalar_lea.sflag (!%p119_p0), [#allocation3], %s124_s28  ;;  %s128_s3 = scalar_lea.vmem (!%p119_p0), [#allocation2], %s273_s29 }
  0x36   : > { %412 = dma.done.wait (%p515_p7), %s125_s2, 64  }
  0x37   : > { %414 = vsyncadd (%p515_p7), %s125_s2, 4294967232  ;;  %vm159_vm0 = vcmask 1043456   ;;  %v158_v0 = vld [vmem:[%s128_s3] sm:$0xf]  ;;  %p150_p10 = scmp.lt.s32.totalorder %s433_s10, 1  ;;  %p152_p11 = scmp.lt.s32.totalorder %s429_s9, 1 }
  0x38   : > { %v160_v1 = vsel %vm159_vm0, %v158_v0, 0.0  ;;  %v163_v2 = vmul.f32 %v158_v0, %v158_v0  ;;  %vm167_vm1 = vcmask 7168   ;;  %vm169_vm2 = vcmask 11264  }
  0x39   : > { %161 = vadd.xlane.f32.xlu0 %v160_v1  ;;  %s631_s10 = smov (!%p150_p10, %s433_s10), 1  ;;  %s633_s9 = smov (!%p152_p11, %s429_s9), 1 }
  0x3a   : > { %v164_v3 = vsel %vm159_vm0, %v163_v2, 0.0  ;;  %s274_s30 = sshll.u32 %s631_s10, 1 }
  0x3b   : > { %s155_s4 = sadd.s32 %s274_s30, %s633_s9 }
  0x3c   : > { %s275_s20 = sshll.u32 %s155_s4, 2 }
  0x3d   : > { %165 = vadd.xlane.f32.xlu0 %v164_v3  ;;  %s157_s14 = scalar_lea.vmem %s611_s1, %s275_s20 }
  0xc6   : > { %v162_v4 = vpop.xlane.xlu0 %161 }
  0xca   : > { %v166_v5 = vpop.xlane.xlu0 %165 }
  0xcb   : > { %v168_v6 = vsel %vm167_vm1, %v162_v4, %v166_v5 }
  0xcc   : > { %170 = vst.msk [vmem:[%s157_s14] sm:$0xf] %vm169_vm2, %v168_v6 }
  0xcd PF: > { %s14_s13 = sadd.s32 1, %s445_s13   ;;  %s617_s6 = smov %s421_s7 }
  0xce   : > { %p11_p7 = scmp.ge.s32.totalorder %s14_s13, 6   ;;  %s618_s7 = smov %s425_s8 }
  0xcf   : > { %s619_s8 = smov %s525_s26  ;;  %s620_s9 = smov %s437_s11 }
  0xd0   : > { %s621_s10 = smov %s441_s12  ;;  %s622_s11 = smov %s625_s15 }
  0xd1   : > { %s623_s12 = smov %s629_s16  ;;  %13 = sbr.rel (!%p11_p7) target bundleno = 5 (0x5), region = 64 }
  0xd8   :  { %198 = vsyncpa [#allocation3], 1 }
  0xd9   :  { %200 = vsyncpa [#allocation3 + $0x1], 1 }

</bundles_post_ra>
